<compile_context>
chip_gen: v5e
topology: v5e:2x2
jax: 0.10.0
libtpu: 0.0.40
codegen_flags: <defaults>
</compile_context>

<pallas_src>
import functools
import math

import jax
import jax.numpy as jnp
from jax.experimental import pallas as pl
from jax.experimental.pallas import tpu as pltpu

HIDDEN_PAD = 128    # lane-dense width of every inter-kernel activation slab
SMALL_N_MAX = 256   # graphs up to this many nodes use the fully fused (un-tiled) GNN stack


# ----------------------------- activations ---------------------------------
def _act(y, act):
    if act == "relu":
        return jnp.maximum(y, 0.0)
    if act == "sigmoid":
        return jax.nn.sigmoid(y)
    if act == "softplus":
        return jax.nn.softplus(y)
    return y


# ======================= K1: fused Feature_encoder ==========================
def _feature_encoder_kernel(x_ref, wt_ref, bt_ref, wbd_ref, o_ref, *,
                            nt_num, table_num, col_emb, splits, out_dim, out_pad):
    x = x_ref[...]                                                    # [TN, F_raw]
    nt = jnp.maximum(
        jnp.dot(x[:, :nt_num], wt_ref[...], preferred_element_type=jnp.float32)
        + bt_ref[...], 0.0)
    stats = x[:, nt_num:nt_num + 2]
    tbl = x[:, nt_num + 2:nt_num + 2 + table_num]
    cols = x[:, nt_num + 2 + table_num:]
    # all per-column encoders as ONE block-diagonal matmul (single MXU push)
    col_enc = jnp.maximum(
        jnp.dot(cols, wbd_ref[...], preferred_element_type=jnp.float32), 0.0)
    # per-table max pooling over that table's columns (static splits)
    pooled = []
    s = 0
    for num in splits:
        pc = col_enc[:, s * col_emb:(s + 1) * col_emb]
        for c in range(1, num):
            pc = jnp.maximum(pc, col_enc[:, (s + c) * col_emb:(s + c + 1) * col_emb])
        pooled.append(pc)
        s += num
    out = jnp.concatenate([nt, stats, tbl] + pooled, axis=-1)         # [TN, out_dim]
    rows = out.shape[0]
    # lane-dense padded store (unmasked vst)
    o_ref[...] = jnp.concatenate(
        [out, jnp.zeros((rows, out_pad - out_dim), jnp.float32)], axis=-1)


def feature_encoder_forward(p, x, table_columns_number, enc, *, row_block=512):
    x = x.astype(jnp.float32)
    N, Fraw = x.shape
    nt_num = 26
    Ttab = enc["encoder_table_num"]
    Ce = enc["encoder_column_embedding_dim"]
    ntd = enc["encoder_node_type_embedding_dim"]
    out_dim = ntd + 2 + Ttab + Ttab * Ce
    assert out_dim <= HIDDEN_PAD
    tn = N if N <= row_block else row_block
    grid = (pl.cdiv(N, tn),)
    kern = functools.partial(
        _feature_encoder_kernel, nt_num=nt_num, table_num=Ttab, col_emb=Ce,
        splits=tuple(int(s) for s in table_columns_number),
        out_dim=out_dim, out_pad=HIDDEN_PAD)
    return pl.pallas_call(
        kern,
        out_shape=jax.ShapeDtypeStruct((N, HIDDEN_PAD), jnp.float32),
        grid=grid,
        in_specs=[pl.BlockSpec((tn, Fraw), lambda i: (i, 0)),
                  pl.BlockSpec(p["wt"].shape, lambda i: (0, 0)),
                  pl.BlockSpec(p["bt"].shape, lambda i: (0, 0)),
                  pl.BlockSpec(p["w_bd"].shape, lambda i: (0, 0))],
        out_specs=pl.BlockSpec((tn, HIDDEN_PAD), lambda i: (i, 0)),
        compiler_params=pltpu.CompilerParams(dimension_semantics=("parallel",)),
    )(x, p["wt"], p["bt"], p["w_bd"])


# ================== K2a: fused 2-layer GNN stack (small N) ===================
# Per-layer fused weight layout (rows zero-padded to HIDDEN_PAD):
#   w_q  : [ Q_in | Q_out | skip_in | skip_out | root ]   (Q scaled by 1/sqrt(E))
#   w_kv : [ K_in | K_out | V_in   | V_out ]
def _gnn_stack_kernel(*refs, n_layers, heads, emb, alpha, out_pad):
    H, E = heads, emb
    G, HE = 2 * H, H * E
    n_in = 3 + 6 * n_layers
    h_ref, min_ref, mout_ref = refs[0], refs[1], refs[2]
    o_ref = refs[n_in]
    q_st, k_st, v_st = refs[n_in + 1], refs[n_in + 2], refs[n_in + 3]

    N = h_ref.shape[0]
    mask_in = min_ref[...] > 0                                         # int8 -> bool
    mask_out = mout_ref[...] > 0
    # per-(direction, head) mask batch built once for both layers
    maskg = jnp.concatenate(
        [jnp.broadcast_to(mask_in[None], (H, N, N)),
         jnp.broadcast_to(mask_out[None], (H, N, N))], axis=0)          # [G, N, N]

    h = h_ref[...]                                                      # [N, 128]
    for l in range(n_layers):
        wq_ref, bq_ref, wkv_ref, bkv_ref, sc_ref, sh_ref = refs[3 + 6 * l:3 + 6 * (l + 1)]
        hb = h.astype(jnp.bfloat16)
        pq = jnp.dot(hb, wq_ref[...].astype(jnp.bfloat16),
                     preferred_element_type=jnp.float32) + bq_ref[...]
        pkv = jnp.dot(hb, wkv_ref[...].astype(jnp.bfloat16),
                      preferred_element_type=jnp.float32) + bkv_ref[...]
        base = (alpha * pq[:, 2 * HE + E:2 * HE + 2 * E]
                + (1.0 - alpha) * pq[:, 2 * HE:2 * HE + E]
                + pq[:, 2 * HE + 2 * E:2 * HE + 3 * E])                 # skips + root
        # stage head-batched Q/K/V (leading batch dim) via VMEM scratch: no value
        # transposes, one batched dot_general instead of per-head lane-sliced dots.
        for g in range(G):
            q_st[g] = pq[:, g * E:(g + 1) * E].astype(jnp.bfloat16)
            k_st[g] = pkv[:, g * E:(g + 1) * E].astype(jnp.bfloat16)
            v_st[g] = pkv[:, (G + g) * E:(G + g + 1) * E].astype(jnp.bfloat16)
        s = jax.lax.dot_general(q_st[...], k_st[...],
                                (((2,), (2,)), ((0,), (0,))),
                                preferred_element_type=jnp.float32)      # [G, N, N]
        s = jnp.where(maskg, s, jnp.float32(-1e30))
        m = jnp.max(s, axis=-1, keepdims=True)
        p = jnp.where(maskg, jnp.exp(s - m), 0.0)
        den = jnp.sum(p, axis=-1, keepdims=True)
        acc = jax.lax.dot_general(p.astype(jnp.bfloat16), v_st[...],
                                  (((2,), (1,)), ((0,), (0,))),
                                  preferred_element_type=jnp.float32)    # [G, N, E]
        attn = acc * pl.reciprocal(jnp.where(den > 0.0, den, 1.0), approx=True)
        a_in = attn[0]
        for hh in range(1, H):
            a_in = a_in + attn[hh]
        a_out = attn[H]
        for hh in range(1, H):
            a_out = a_out + attn[H + hh]
        inv_h = 1.0 / H                                 # concat=False -> mean over heads
        y = base + alpha * (a_out * inv_h) + (1.0 - alpha) * (a_in * inv_h)
        y = jnp.maximum(y * sc_ref[...] + sh_ref[...], 0.0)   # folded BN (eval) + relu
        h = jnp.concatenate([y, jnp.zeros((N, out_pad - E), jnp.float32)], axis=-1)
    o_ref[...] = h


def gnn_stack_small(h_pad, layers, mask_in, mask_out, heads, emb, alpha):
    N = h_pad.shape[0]
    G = 2 * heads
    flat = []
    for lp in layers:
        flat += [lp["w_q"], lp["b_q"], lp["w_kv"], lp["b_kv"],
                 lp["bn_scale"], lp["bn_shift"]]
    return pl.pallas_call(
        functools.partial(_gnn_stack_kernel, n_layers=len(layers), heads=heads,
                          emb=emb, alpha=float(alpha), out_pad=HIDDEN_PAD),
        out_shape=jax.ShapeDtypeStruct((N, HIDDEN_PAD), jnp.float32),
        scratch_shapes=[pltpu.VMEM((G, N, emb), jnp.bfloat16),
                        pltpu.VMEM((G, N, emb), jnp.bfloat16),
                        pltpu.VMEM((G, N, emb), jnp.bfloat16)],
        compiler_params=pltpu.CompilerParams(vmem_limit_bytes=48 * 1024 * 1024),
    )(h_pad, mask_in, mask_out, *flat)


# ============ K2b: flash-tiled GNN layer (large N / production path) =========
def _gnn_flash_layer_kernel(nz_ref, hq_ref, hkv_ref, wq_ref, bq_ref, wkv_ref, bkv_ref,
                            min_ref, mout_ref, sc_ref, sh_ref, o_ref,
                            q_st, base_st, kv_st, m_st, l_st, acc_st,
                            *, heads, emb, alpha, out_pad):
    H, E = heads, emb
    G, HE = 2 * H, H * E
    qi = pl.program_id(0)
    ki = pl.program_id(1)
    nk = pl.num_programs(1)
    TQ = hq_ref.shape[0]
    TK = hkv_ref.shape[0]

    @pl.when(ki == 0)
    def _init():
        hb = hq_ref[...].astype(jnp.bfloat16)
        pq = jnp.dot(hb, wq_ref[...].astype(jnp.bfloat16),
                     preferred_element_type=jnp.float32) + bq_ref[...]
        for g in range(G):
            q_st[g] = pq[:, g * E:(g + 1) * E].astype(jnp.bfloat16)
        base_st[...] = (alpha * pq[:, 2 * HE + E:2 * HE + 2 * E]
                        + (1.0 - alpha) * pq[:, 2 * HE:2 * HE + E]
                        + pq[:, 2 * HE + 2 * E:2 * HE + 3 * E])
        m_st[...] = jnp.full_like(m_st, -1e30)
        l_st[...] = jnp.zeros_like(l_st)
        acc_st[...] = jnp.zeros_like(acc_st)

    # block-sparse skip of fully masked (q, kv) tiles (avg degree ~1-2 in query plans)
    @pl.when(nz_ref[qi * nk + ki] > 0)
    def _compute():
        hb = hkv_ref[...].astype(jnp.bfloat16)
        pkv = jnp.dot(hb, wkv_ref[...].astype(jnp.bfloat16),
                      preferred_element_type=jnp.float32) + bkv_ref[...]
        for g in range(G):
            kv_st[0, g] = pkv[:, g * E:(g + 1) * E].astype(jnp.bfloat16)
            kv_st[1, g] = pkv[:, (G + g) * E:(G + g + 1) * E].astype(jnp.bfloat16)
        mask_in = min_ref[...] > 0
        mask_out = mout_ref[...] > 0
        maskg = jnp.concatenate(
            [jnp.broadcast_to(mask_in[None], (H, TQ, TK)),
             jnp.broadcast_to(mask_out[None], (H, TQ, TK))], axis=0)
        s = jax.lax.dot_general(q_st[...], kv_st[0],
                                (((2,), (2,)), ((0,), (0,))),
                                preferred_element_type=jnp.float32)      # [G, TQ, TK]
        s = jnp.where(maskg, s, jnp.float32(-1e30))
        m_prev = m_st[...]
        m_new = jnp.maximum(m_prev, jnp.max(s, axis=-1, keepdims=True))
        corr = jnp.exp(m_prev - m_new)                                   # f32 online softmax
        p = jnp.where(maskg, jnp.exp(s - m_new), 0.0)
        l_st[...] = corr * l_st[...] + jnp.sum(p, axis=-1, keepdims=True)
        acc_st[...] = corr * acc_st[...] + jax.lax.dot_general(
            p.astype(jnp.bfloat16), kv_st[1],
            (((2,), (1,)), ((0,), (0,))), preferred_element_type=jnp.float32)
        m_st[...] = m_new

    @pl.when(ki == nk - 1)
    def _fin():
        l = l_st[...]
        attn = acc_st[...] * pl.reciprocal(jnp.where(l > 0.0, l, 1.0), approx=True)
        a_in = attn[0]
        for hh in range(1, H):
            a_in = a_in + attn[hh]
        a_out = attn[H]
        for hh in range(1, H):
            a_out = a_out + attn[H + hh]
        inv_h = 1.0 / H
        y = base_st[...] + alpha * (a_out * inv_h) + (1.0 - alpha) * (a_in * inv_h)
        y = jnp.maximum(y * sc_ref[...] + sh_ref[...], 0.0)
        o_ref[...] = jnp.concatenate(
            [y, jnp.zeros((TQ, out_pad - E), jnp.float32)], axis=-1)


def _gnn_layer_flash_call(h, lp, mask_in, mask_out, nz, heads, emb, alpha, *, tile):
    Np, P = h.shape
    nb = Np // tile
    G = 2 * heads
    grid_spec = pltpu.PrefetchScalarGridSpec(
        num_scalar_prefetch=1,
        grid=(nb, nb),
        in_specs=[
            pl.BlockSpec((tile, P), lambda qi, ki, nz_r: (qi, 0)),       # h (q rows)
            pl.BlockSpec((tile, P), lambda qi, ki, nz_r: (ki, 0)),       # h (kv rows)
            pl.BlockSpec(lp["w_q"].shape, lambda qi, ki, nz_r: (0, 0)),
            pl.BlockSpec(lp["b_q"].shape, lambda qi, ki, nz_r: (0, 0)),
            pl.BlockSpec(lp["w_kv"].shape, lambda qi, ki, nz_r: (0, 0)),
            pl.BlockSpec(lp["b_kv"].shape, lambda qi, ki, nz_r: (0, 0)),
            pl.BlockSpec((tile, tile), lambda qi, ki, nz_r: (qi, ki)),   # mask_in  (int8)
            pl.BlockSpec((tile, tile), lambda qi, ki, nz_r: (qi, ki)),   # mask_out (int8)
            pl.BlockSpec(lp["bn_scale"].shape, lambda qi, ki, nz_r: (0, 0)),
            pl.BlockSpec(lp["bn_shift"].shape, lambda qi, ki, nz_r: (0, 0)),
        ],
        out_specs=pl.BlockSpec((tile, HIDDEN_PAD), lambda qi, ki, nz_r: (qi, 0)),
        scratch_shapes=[
            pltpu.VMEM((G, tile, emb), jnp.bfloat16),    # staged Q (scale pre-folded)
            pltpu.VMEM((tile, emb), jnp.float32),        # skip/root base
            pltpu.VMEM((2, G, tile, emb), jnp.bfloat16), # staged K / V
            pltpu.VMEM((G, tile, 1), jnp.float32),       # running max
            pltpu.VMEM((G, tile, 1), jnp.float32),       # running denominator
            pltpu.VMEM((G, tile, emb), jnp.float32),     # running numerator
        ],
    )
    return pl.pallas_call(
        functools.partial(_gnn_flash_layer_kernel, heads=heads, emb=emb,
                          alpha=float(alpha), out_pad=HIDDEN_PAD),
        out_shape=jax.ShapeDtypeStruct((Np, HIDDEN_PAD), jnp.float32),
        grid_spec=grid_spec,
        compiler_params=pltpu.CompilerParams(
            dimension_semantics=("parallel", "arbitrary")),
    )(nz, h, h, lp["w_q"], lp["b_q"], lp["w_kv"], lp["b_kv"],
      mask_in, mask_out, lp["bn_scale"], lp["bn_shift"])


def gnn_stack_flash(h_pad, layers, edge_index, n_nodes, heads, emb, alpha, *,
                    tile=256, pad_to=0):
    P = h_pad.shape[1]
    Np = int(pl.cdiv(max(n_nodes, pad_to), tile)) * tile
    src, dst = edge_index[0], edge_index[1]
    # int8 masks (4x less HBM traffic / VMEM than f32); duplicate edges collapse (see note)
    mask_in = jnp.zeros((Np, Np), jnp.int8).at[dst, src].set(1)
    mask_out = jnp.zeros((Np, Np), jnp.int8).at[src, dst].set(1)
    nb = Np // tile
    nz = jnp.zeros((nb, nb), jnp.int32).at[dst // tile, src // tile].set(1)
    nz = nz.at[src // tile, dst // tile].set(1)
    nz = nz.reshape(-1)
    h = h_pad
    if Np != n_nodes:
        h = jnp.zeros((Np, P), jnp.float32).at[:n_nodes].set(h_pad)
    for lp in layers:
        h = _gnn_layer_flash_call(h, lp, mask_in, mask_out, nz, heads, emb, alpha,
                                  tile=tile)
    return h[:n_nodes]


def bigg_gnn_forward(p, h_enc, edge_index, enc):
    N = h_enc.shape[0]
    H = enc["encoder_attention_heads"]
    E = enc["encoder_gnn_embedding_dim"]
    alpha = enc["encoder_dirgnn_alpha"]
    if N <= SMALL_N_MAX:
        src, dst = edge_index[0], edge_index[1]
        # mask_in[i, j] = 1 iff original edge j->i ; mask_out = flipped-edge mask.
        # NOTE: duplicate edges collapse (same as previous accepted version).
        mask_in = jnp.zeros((N, N), jnp.int8).at[dst, src].set(1)
        mask_out = jnp.zeros((N, N), jnp.int8).at[src, dst].set(1)
        return gnn_stack_small(h_enc, p["layers"], mask_in, mask_out, H, E, alpha)
    return gnn_stack_flash(h_enc, p["layers"], edge_index, N, H, E, alpha, tile=256)


# ====================== K3: fused GRU aggregation + Estimator ================
def _gru_estimator_kernel(*refs, T, B, Hd, n_fcn):
    n_lin = n_fcn + 3 + 3 + 2
    sel_ref, h_ref, wih_ref, bi_ref, whr_ref, whz_ref, whn_ref, bhn_ref = refs[:8]
    wb = refs[8:8 + 2 * n_lin]
    oe_ref, ov_ref, oiv_ref = refs[8 + 2 * n_lin:8 + 2 * n_lin + 3]
    xr_s, xz_s, xn_s = refs[8 + 2 * n_lin + 3:]

    # to_dense_batch as a one-hot gather matmul: row t*B+b = h[node] (zero padding at end)
    dense = jnp.dot(sel_ref[...], h_ref[...], preferred_element_type=jnp.float32)
    # hoisted GRU input projections for ALL timesteps (one wide bf16 MXU push);
    # gate biases for r/z (input+hidden) and b_in already folded into bi.
    xp = jnp.dot(dense.astype(jnp.bfloat16), wih_ref[...].astype(jnp.bfloat16),
                 preferred_element_type=jnp.float32) + bi_ref[...]        # [T*B, 3*Hd]
    xr_s[...] = xp[:, :Hd]
    xz_s[...] = xp[:, Hd:2 * Hd]
    xn_s[...] = xp[:, 2 * Hd:3 * Hd]

    whr, whz, whn, bhn = whr_ref[...], whz_ref[...], whn_ref[...], bhn_ref[...]

    def step(t, hprev):
        off = t * B
        xr = xr_s[pl.ds(off, B), :]
        xz = xz_s[pl.ds(off, B), :]
        xn = xn_s[pl.ds(off, B), :]
        # recurrent dots kept f32: latency-bound tiny pushes, v5e has no bf16 VPU/EUP
        r = jax.nn.sigmoid(xr + jnp.dot(hprev, whr, preferred_element_type=jnp.float32))
        z = jax.nn.sigmoid(xz + jnp.dot(hprev, whz, preferred_element_type=jnp.float32))
        n = jnp.tanh(xn + r * (jnp.dot(hprev, whn, preferred_element_type=jnp.float32)
                               + bhn))
        return (1.0 - z) * n + z * hprev

    h_gru = jax.lax.fori_loop(0, T, step, jnp.zeros((B, Hd), jnp.float32), unroll=2)

    def lin(v, idx, act):
        y = (jnp.dot(v, wb[2 * idx][...], preferred_element_type=jnp.float32)
             + wb[2 * idx + 1][...])
        return _act(y, act)

    h = h_gru
    for i in range(n_fcn):                        # dropout = identity (eval)
        h = lin(h, i, "relu")
    xe = lin(lin(lin(h, n_fcn + 0, "relu"), n_fcn + 1, "relu"), n_fcn + 2, "sigmoid")
    xv = lin(lin(lin(h, n_fcn + 3, "relu"), n_fcn + 4, "relu"), n_fcn + 5, "softplus")
    # fs: Linear(2, 8) on cat([xe, xv]) via two rank-1 broadcasts (avoids 1-lane concat)
    w_fs0, b_fs0 = wb[2 * (n_fcn + 6)][...], wb[2 * (n_fcn + 6) + 1][...]
    t0 = xe * w_fs0[0:1, :] + xv * w_fs0[1:2, :] + b_fs0
    xiv = lin(t0, n_fcn + 7, "sigmoid")
    oe_ref[...] = xe
    ov_ref[...] = xv
    oiv_ref[...] = xiv


def gru_estimator_forward(gru_p, est_p, h_gnn, batch_index):
    N = h_gnn.shape[0]
    Hd = gru_p["whr"].shape[0]
    B = int(batch_index.max()) + 1
    counts = jnp.bincount(batch_index, length=B)
    ptr = jnp.concatenate([jnp.zeros((1,), counts.dtype), jnp.cumsum(counts)[:-1]])
    pos = jnp.arange(N) - ptr[batch_index]
    T = int(counts.max())
    # one-hot selection matrix implementing to_dense_batch (padding at sequence end)
    sel = jnp.zeros((T * B, N), jnp.float32).at[pos * B + batch_index,
                                                jnp.arange(N)].set(1.0)
    n_fcn = len(est_p["fcn"])
    layers = list(est_p["fcn"]) + list(est_p["e"]) + list(est_p["v"]) + list(est_p["fs"])
    flat = []
    for (w, b) in layers:
        flat.append(w.astype(jnp.float32))
        flat.append(b.reshape(1, -1).astype(jnp.float32))
    out_shapes = tuple(jax.ShapeDtypeStruct((B, 1), jnp.float32) for _ in range(3))
    return pl.pallas_call(
        functools.partial(_gru_estimator_kernel, T=T, B=B, Hd=Hd, n_fcn=n_fcn),
        out_shape=out_shapes,
        scratch_shapes=[pltpu.VMEM((T * B, Hd), jnp.float32) for _ in range(3)],
        compiler_params=pltpu.CompilerParams(vmem_limit_bytes=32 * 1024 * 1024),
    )(sel, h_gnn, gru_p["wih"], gru_p["bi"], gru_p["whr"], gru_p["whz"],
      gru_p["whn"], gru_p["bhn"], *flat)


# ----------------------------- parameter init -------------------------------
def init_linear(key, fan_in, fan_out, bias=True):
    k1, k2 = jax.random.split(key)
    bound = 1.0 / math.sqrt(fan_in)
    w = jax.random.uniform(k1, (fan_in, fan_out), jnp.float32, -bound, bound)
    b = jax.random.uniform(k2, (fan_out,), jnp.float32, -bound, bound) if bias else None
    return w, b


def _pad_rows(w, rows):
    if w.shape[0] == rows:
        return w
    return jnp.concatenate(
        [w, jnp.zeros((rows - w.shape[0], w.shape[1]), w.dtype)], axis=0)


def init_params(key, enc, est):
    keys = iter(jax.random.split(key, 256))
    H = enc["encoder_attention_heads"]
    E = enc["encoder_gnn_embedding_dim"]
    Ce = enc["encoder_column_embedding_dim"]
    C = enc["encoder_column_num"]
    Ttab = enc["encoder_table_num"]
    ntd = enc["encoder_node_type_embedding_dim"]
    node_feature_dim = ntd + 2 + Ttab + Ttab * Ce
    P = HIDDEN_PAD

    # ---- Feature_encoder ----
    wt, bt = init_linear(next(keys), 26, ntd)
    w_cols = [init_linear(next(keys), 8, Ce, bias=False)[0] for _ in range(C)]
    w_bd = jax.scipy.linalg.block_diag(*w_cols).astype(jnp.float32)   # [C*8, C*Ce]
    fe = dict(wt=wt, bt=bt.reshape(1, -1), w_bd=w_bd)

    # ---- BiGG: DirGNNConv(TransformerConv) + BatchNorm per layer ----
    scale = 1.0 / math.sqrt(E)        # attention 1/sqrt(D), folded into Q projection
    layers = []
    cur = node_feature_dim
    for _ in range(enc["encoder_conv_layers"]):
        def dir_params(cin):
            wq, bq = init_linear(next(keys), cin, H * E)
            wk, bk = init_linear(next(keys), cin, H * E)
            wv, bv = init_linear(next(keys), cin, H * E)
            wsk, bsk = init_linear(next(keys), cin, E)   # lin_skip (root_weight=True)
            return wq * scale, bq * scale, wk, bk, wv, bv, wsk, bsk

        qi_, bqi, ki_, bki, vi_, bvi, ski, bski = dir_params(cur)
        qo_, bqo, ko_, bko, vo_, bvo, sko, bsko = dir_params(cur)
        wr, br = init_linear(next(keys), cur, E)          # DirGNNConv root linear
        w_q = jnp.concatenate([qi_, qo_, ski, sko, wr], axis=1)
        b_q = jnp.concatenate([bqi, bqo, bski, bsko, br]).reshape(1, -1)
        w_kv = jnp.concatenate([ki_, ko_, vi_, vo_], axis=1)
        b_kv = jnp.concatenate([bki, bko, bvi, bvo]).reshape(1, -1)
        eps = 1e-5                                        # BN eval stats: mean=0, var=1
        bn_scale = (jnp.ones((E,), jnp.float32) / jnp.sqrt(1.0 + eps)).reshape(1, -1)
        bn_shift = jnp.zeros((1, E), jnp.float32)
        layers.append(dict(w_q=_pad_rows(w_q, P), b_q=b_q,
                           w_kv=_pad_rows(w_kv, P), b_kv=b_kv,
                           bn_scale=bn_scale, bn_shift=bn_shift))
        cur = E

    hb = 1.0 / math.sqrt(E)
    wih = jax.random.uniform(next(keys), (E, 3 * E), jnp.float32, -hb, hb)
    whh = jax.random.uniform(next(keys), (E, 3 * E), jnp.float32, -hb, hb)
    bih = jax.random.uniform(next(keys), (3 * E,), jnp.float32, -hb, hb)
    bhh = jax.random.uniform(next(keys), (3 * E,), jnp.float32, -hb, hb)
    gru = dict(
        wih=_pad_rows(wih, P),                                 # padded to 128-lane input
        bi=jnp.concatenate([bih[:E] + bhh[:E], bih[E:2 * E] + bhh[E:2 * E],
                            bih[2 * E:]]).reshape(1, -1),
        whr=whh[:, :E], whz=whh[:, E:2 * E], whn=whh[:, 2 * E:],
        bhn=bhh[2 * E:].reshape(1, -1),
    )
    bigg = dict(layers=layers, gru=gru)

    # ---- Estimator ----
    ed = est["estimator_estimation_embedding_dim"]
    fcn = [init_linear(next(keys), E, ed)]
    for i in range(est["estimator_fcn_layers"] - 1):
        if i == 0:
            fcn.append(init_linear(next(keys), ed, ed // 4)); ed //= 4
        else:
            fcn.append(init_linear(next(keys), ed, ed // 2)); ed //= 2
    de, dv = ed, ed
    e_head, v_head = [], []
    for i in range(3):
        if i != 2:
            e_head.append(init_linear(next(keys), de, de // 2)); de //= 2
            v_head.append(init_linear(next(keys), dv, dv // 2)); dv //= 2
        else:
            e_head.append(init_linear(next(keys), de, 1))
            v_head.append(init_linear(next(keys), dv, 1))
    fs = [init_linear(next(keys), 2, 8), init_linear(next(keys), 8, 1)]
    estp = dict(fcn=fcn, e=e_head, v=v_head, fs=fs)

    return dict(fe=fe, bigg=bigg, est=estp), node_feature_dim


# ----------------------------- forward pass ---------------------------------
def reqo_forward(params, x, edge_index, batch_index, table_columns_number, enc):
    h_enc = feature_encoder_forward(params["fe"], x, table_columns_number, enc)
    h_gnn = bigg_gnn_forward(params["bigg"], h_enc, edge_index, enc)
    return gru_estimator_forward(params["bigg"]["gru"], params["est"], h_gnn, batch_index)


# ----------------------------- main ------------------------------------------
if __name__ == "__main__":
    encoder_params = dict(
        encoder_attention_heads=2,
        encoder_gnn_dropout_rate=0.1,
        encoder_gnn_embedding_dim=32,
        encoder_conv_layers=2,
        encoder_dirgnn_alpha=0.5,
        encoder_column_num=6,
        encoder_table_num=3,
        encoder_node_type_embedding_dim=16,
        encoder_column_embedding_dim=8,
    )
    estimator_params = dict(
        estimator_fcn_layers=3,
        estimator_estimation_embedding_dim=128,
        estimator_fcn_dropout_rate=0.1,
    )

    key = jax.random.PRNGKey(0)
    kp, kx = jax.random.split(key)
    params, node_feature_dim = init_params(kp, encoder_params, estimator_params)

    # Two small query-plan graphs, 4 nodes each (N = 8 total nodes).
    N_nodes = 8
    feat_dim = 26 + 2 + encoder_params["encoder_table_num"] \
        + encoder_params["encoder_column_num"] * 8              # 79
    x = jax.random.uniform(kx, (N_nodes, feat_dim), jnp.float32)
    edge_index = jnp.array([[1, 2, 3, 5, 6, 7],
                            [0, 0, 1, 4, 4, 6]], dtype=jnp.int32)   # child -> parent
    batch_index = jnp.array([0, 0, 0, 0, 1, 1, 1, 1], dtype=jnp.int32)
    table_columns_number = [2, 2, 2]   # static, sums to encoder_column_num

    pred, va, iv = reqo_forward(params, x, edge_index, batch_index,
                                table_columns_number, encoder_params)
    jax.block_until_ready((pred, va, iv))
    assert pred.shape == (2, 1) and va.shape == (2, 1) and iv.shape == (2, 1)

    # --- cross-check: flash-tiled (gridded, block-sparse) GNN path vs fused small path ---
    enc = encoder_params
    H = enc["encoder_attention_heads"]
    E = enc["encoder_gnn_embedding_dim"]
    alpha = enc["encoder_dirgnn_alpha"]
    h_enc = feature_encoder_forward(params["fe"], x, table_columns_number, enc)
    h_small = bigg_gnn_forward(params["bigg"], h_enc, edge_index, enc)
    for tile, pad_to in ((128, 128), (128, 256)):   # 2nd case exercises kv accumulation + tile skip
        h_flash = gnn_stack_flash(h_enc, params["bigg"]["layers"], edge_index, N_nodes,
                                  H, E, alpha, tile=tile, pad_to=pad_to)
        diff = float(jnp.max(jnp.abs(h_flash[:, :E] - h_small[:, :E])))
        assert diff < 2e-2, f"flash-tiled GNN path mismatch: max abs diff {diff}"

    print("KERNEL_OK")
</pallas_src>

<mosaic_0001>
module attributes {stable_mosaic.version = 11 : i64} {
  func.func @_feature_encoder_kernel(%arg0: i32, %arg1: memref<8x79xf32, #tpu.memory_space<vmem>>, %arg2: memref<26x16xf32, #tpu.memory_space<vmem>>, %arg3: memref<1x16xf32, #tpu.memory_space<vmem>>, %arg4: memref<48x48xf32, #tpu.memory_space<vmem>>, %arg5: memref<8x128xf32, #tpu.memory_space<vmem>>) attributes {dimension_semantics = [#tpu.dimension_semantics<parallel>], iteration_bounds = array<i64: 1>, scalar_prefetch = 0 : i64, scratch_operands = 0 : i64, tpu.core_type = #tpu.core_type<tc>, window_params = [{transform_indices = @transform_0, window_bounds = array<i64: 8, 79>}, {pipeline_mode = #tpu.pipeline_mode<synchronous>, transform_indices = @transform_1, window_bounds = array<i64: 26, 16>}, {pipeline_mode = #tpu.pipeline_mode<synchronous>, transform_indices = @transform_2, window_bounds = array<i64: 1, 16>}, {pipeline_mode = #tpu.pipeline_mode<synchronous>, transform_indices = @transform_3, window_bounds = array<i64: 48, 48>}, {transform_indices = @transform_4, window_bounds = array<i64: 8, 128>}]} {
    %c0 = arith.constant 0 : index
    %c0_0 = arith.constant 0 : index
    %0 = vector.load %arg1[%c0, %c0_0] : memref<8x79xf32, #tpu.memory_space<vmem>>, vector<8x79xf32>
    %1 = vector.extract_strided_slice %0 {offsets = [0, 0], sizes = [8, 26], strides = [1, 1]} : vector<8x79xf32> to vector<8x26xf32>
    %c0_1 = arith.constant 0 : index
    %c0_2 = arith.constant 0 : index
    %2 = vector.load %arg2[%c0_1, %c0_2] : memref<26x16xf32, #tpu.memory_space<vmem>>, vector<26x16xf32>
    %cst = arith.constant dense<0.000000e+00> : vector<8x16xf32>
    %3 = tpu.matmul %1, %2, %cst {dimension_numbers = #tpu.dot_dimension_numbers<[1], [0], [0], [1], [0, 0, 1, 1], [], []>} : vector<8x26xf32>, vector<26x16xf32>, vector<8x16xf32> -> vector<8x16xf32>
    %c0_3 = arith.constant 0 : index
    %c0_4 = arith.constant 0 : index
    %4 = vector.load %arg3[%c0_3, %c0_4] : memref<1x16xf32, #tpu.memory_space<vmem>>, vector<1x16xf32>
    %5 = vector.broadcast %4 : vector<1x16xf32> to vector<8x16xf32>
    %6 = arith.addf %3, %5 : vector<8x16xf32>
    %cst_5 = arith.constant 0.000000e+00 : f32
    %7 = vector.broadcast %cst_5 : f32 to vector<8x16xf32>
    %8 = arith.maximumf %6, %7 : vector<8x16xf32>
    %9 = vector.extract_strided_slice %0 {offsets = [0, 26], sizes = [8, 2], strides = [1, 1]} : vector<8x79xf32> to vector<8x2xf32>
    %10 = vector.extract_strided_slice %0 {offsets = [0, 28], sizes = [8, 3], strides = [1, 1]} : vector<8x79xf32> to vector<8x3xf32>
    %11 = vector.extract_strided_slice %0 {offsets = [0, 31], sizes = [8, 48], strides = [1, 1]} : vector<8x79xf32> to vector<8x48xf32>
    %c0_6 = arith.constant 0 : index
    %c0_7 = arith.constant 0 : index
    %12 = vector.load %arg4[%c0_6, %c0_7] : memref<48x48xf32, #tpu.memory_space<vmem>>, vector<48x48xf32>
    %cst_8 = arith.constant dense<0.000000e+00> : vector<8x48xf32>
    %13 = tpu.matmul %11, %12, %cst_8 {dimension_numbers = #tpu.dot_dimension_numbers<[1], [0], [0], [1], [0, 0, 1, 1], [], []>} : vector<8x48xf32>, vector<48x48xf32>, vector<8x48xf32> -> vector<8x48xf32>
    %cst_9 = arith.constant 0.000000e+00 : f32
    %14 = vector.broadcast %cst_9 : f32 to vector<8x48xf32>
    %15 = arith.maximumf %13, %14 : vector<8x48xf32>
    %16 = vector.extract_strided_slice %15 {offsets = [0, 0], sizes = [8, 8], strides = [1, 1]} : vector<8x48xf32> to vector<8x8xf32>
    %17 = vector.extract_strided_slice %15 {offsets = [0, 8], sizes = [8, 8], strides = [1, 1]} : vector<8x48xf32> to vector<8x8xf32>
    %18 = arith.maximumf %16, %17 : vector<8x8xf32>
    %19 = vector.extract_strided_slice %15 {offsets = [0, 16], sizes = [8, 8], strides = [1, 1]} : vector<8x48xf32> to vector<8x8xf32>
    %20 = vector.extract_strided_slice %15 {offsets = [0, 24], sizes = [8, 8], strides = [1, 1]} : vector<8x48xf32> to vector<8x8xf32>
    %21 = arith.maximumf %19, %20 : vector<8x8xf32>
    %22 = vector.extract_strided_slice %15 {offsets = [0, 32], sizes = [8, 8], strides = [1, 1]} : vector<8x48xf32> to vector<8x8xf32>
    %23 = vector.extract_strided_slice %15 {offsets = [0, 40], sizes = [8, 8], strides = [1, 1]} : vector<8x48xf32> to vector<8x8xf32>
    %24 = arith.maximumf %22, %23 : vector<8x8xf32>
    %25 = tpu.concatenate %8, %9, %10, %18, %21, %24 in 1 : vector<8x16xf32>, vector<8x2xf32>, vector<8x3xf32>, vector<8x8xf32>, vector<8x8xf32>, vector<8x8xf32> -> vector<8x45xf32>
    %cst_10 = arith.constant 0.000000e+00 : f32
    %26 = vector.broadcast %cst_10 : f32 to vector<8x83xf32>
    %27 = tpu.concatenate %25, %26 in 1 : vector<8x45xf32>, vector<8x83xf32> -> vector<8x128xf32>
    %c0_11 = arith.constant 0 : index
    %c0_12 = arith.constant 0 : index
    %28 = vector.load %arg5[%c0_11, %c0_12] : memref<8x128xf32, #tpu.memory_space<vmem>>, vector<8x128xf32>
    tpu.vector_store %arg5[%c0_11, %c0_12], %27 {strides = array<i32>} : memref<8x128xf32, #tpu.memory_space<vmem>>, vector<8x128xf32>,
    return
  }
  func.func @transform_0(%arg0: i32) -> (i32, i32) {
    %c0_i32 = arith.constant 0 : i32
    %c0_i32_0 = arith.constant 0 : i32
    return %arg0, %c0_i32 : i32, i32
  }
  func.func @transform_1(%arg0: i32) -> (i32, i32) {
    %c0_i32 = arith.constant 0 : i32
    %c0_i32_0 = arith.constant 0 : i32
    %c0_i32_1 = arith.constant 0 : i32
    return %c0_i32, %c0_i32_0 : i32, i32
  }
  func.func @transform_2(%arg0: i32) -> (i32, i32) {
    %c0_i32 = arith.constant 0 : i32
    %c0_i32_0 = arith.constant 0 : i32
    %c0_i32_1 = arith.constant 0 : i32
    return %c0_i32, %c0_i32_0 : i32, i32
  }
  func.func @transform_3(%arg0: i32) -> (i32, i32) {
    %c0_i32 = arith.constant 0 : i32
    %c0_i32_0 = arith.constant 0 : i32
    %c0_i32_1 = arith.constant 0 : i32
    return %c0_i32, %c0_i32_0 : i32, i32
  }
  func.func @transform_4(%arg0: i32) -> (i32, i32) {
    %c0_i32 = arith.constant 0 : i32
    %c0_i32_0 = arith.constant 0 : i32
    return %arg0, %c0_i32 : i32, i32
  }
}

</mosaic_0001>

<bundles_post_ra>
// kernel: tpu_custom_call.1
= control target key start
LH: loop header
LB: loop body
LE: loop exit
PB: predicated region body
PF: predicated region fallthrough
CT: control target
= control target key end

     0   :  { %9 = vsyncpa [#allocation3], 0  ;;  %s286_s0 = inlined_call_operand.hbm [shape: f32[8,79], index: 0, kind: input, shape index: {}]   ;;  %s287_s1 = inlined_call_operand.vmem [shape: f32[26,16], index: 1, kind: input, shape index: {}]   ;;  %s288_s2 = inlined_call_operand.vmem [shape: f32[1,16], index: 2, kind: input, shape index: {}]   ;;  %s289_s3 = inlined_call_operand.vmem [shape: f32[48,48], index: 3, kind: input, shape index: {}]   ;;  %s290_s4 = inlined_call_operand.hbm [shape: f32[8,128], index: 4, kind: output, shape index: {}]  }
   0x1   :  { %10 = vsyncpa [#allocation4], 0  ;;  %s16_s17 = sshll.u32 %s286_s0, 4  ;;  %s214_s18 = smov [#allocation2]   ;;  %s17_s17 = int_to_ptr.hbm [resolvable:$true] %s16_s17 }
   0x2   :  { %s18_s19 = sshll.u32 %s214_s18, 4  ;;  %s19_s19 = int_to_ptr.vmem [resolvable:$true] %s18_s19 }
   0x3   :  { %21 = dma.hbm_to_vmem [thread:$0]  %s17_s17, 128, %s19_s19, [#allocation3]  }
   0x4   :  { %210 = dma.done.wait [#allocation3], 128  }
   0x5   :  { %211 = vsyncadd [#allocation3], 4294967168  ;;  %v32_v0 = vld [vmem:[#allocation2] sm:$0xff]  ;;  %v75_v1 = vld [vmem:[%s289_s3 + $0x28] sm:$0xff]  ;;  %s215_s24 = smov 97   ;;  %vm78_vm0 = vcmask 392192  }
   0x6   :  { %v74_v2 = vld [vmem:[%s289_s3 + $0x20] sm:$0xff]  ;;  %76 = vrot.lane.b32.xlu0 %v32_v0, %s215_s24  ;;  %91 = vmatpush.msra.mxu1 %v75_v1  ;;  %v73_v3 = vld [vmem:[%s289_s3 + $0x18] sm:$0xff]  ;;  %v72_v4 = vld [vmem:[%s289_s3 + $0x10] sm:$0xff]  ;;  %s216_s6 = smov 118   ;;  %vm45_vm1 = vcmask 1041408   ;;  %vm41_vm2 = vcmask 211968  }
   0x7   :  { %v71_v5 = vld [vmem:[%s289_s3 + $0x8] sm:$0xff]  ;;  %v70_v6 = vld [vmem:[%s289_s3] sm:$0xff]  ;;  %107 = vrot.lane.b32.xlu1 %v32_v0, %s216_s6  ;;  %v36_v8 = vld [vmem:[%s287_s1 + $0x18] sm:$0x3]  ;;  %s217_s14 = smov 120   ;;  %s218_s15 = smov 13  }
   0x8   :  { %92 = vmatpush.msra.mxu1 %v74_v2  ;;  %v35_v9 = vld [vmem:[%s287_s1 + $0x10] sm:$0xff]  ;;  %150 = vmatpush.msk.msra.mxu0 %vm45_vm1, %v36_v8  ;;  %v34_v10 = vld [vmem:[%s287_s1 + $0x8] sm:$0xff]  ;;  %v33_v11 = vld [vmem:[%s287_s1] sm:$0xff]  ;;  %s219_s16 = smov 21   ;;  %s220_s17 = smov 5   ;;  %vm120_vm3 = vcmask 130048  }
   0x9   :  { %v161_v16 = vld [vmem:[%s288_s2] ss:$0 sm:$0xff]  ;;  %vm122_vm4 = vcmask 146432   ;;  %vm124_vm5 = vcmask 171008   ;;  %vm126_vm6 = vcmask 236544   ;;  %vm128_vm7 = vcmask 302080  }
   0xa   :  { %93 = vmatpush.msra.mxu1 %v73_v3  ;;  %62 = vmatpush.msra.mxu0 %v35_v9  ;;  %s221_s1 = smov [#allocation5]   ;;  %s140_s23 = sshll.u32 %s290_s4, 4  ;;  %vm130_vm8 = vcmask 367616   ;;  %s141_s23 = int_to_ptr.hbm [resolvable:$true] %s140_s23 }
   0xb   :  { %s138_s20 = sshll.u32 %s221_s1, 4  ;;  %s139_s20 = int_to_ptr.vmem [resolvable:$true] %s138_s20 }
   0xc   :  { %94 = vmatpush.msra.mxu1 %v72_v4  ;;  %63 = vmatpush.msra.mxu0 %v34_v10 }
   0xe   :  { %95 = vmatpush.msra.mxu1 %v71_v5  ;;  %64 = vmatpush.msra.mxu0 %v33_v11 }
   0xf   :  { %151 = vmatmul.msk.f32.vlgmr.msra.gmra.mxu0 %vm41_vm2, %v32_v0 }
  0x10   :  { %96 = vmatpush.msra.mxu1 %v70_v6 }
  0x78   :  { %v77_v7 = vpop.permute.xlu0 %76 }
  0x79   :  { %152 = vmatmul.msk.f32.vlgmr.msra.gmra.mxu1 %vm78_vm0, %v77_v7  ;;  %v108_v19 = vpop.permute.xlu1 %107 }
  0x8c   :  { %v66_v17 = vpop.f32.mrf.mxu0 }
  0x8d   :  { %v67_v18 = vadd.f32 %v161_v16, %v66_v17 }
  0x8f   :  { %v69_v21 = vmax.f32 %v67_v18, 0.0 }
  0x91   :  { %v121_v22 = vsel %vm120_vm3, %v69_v21, %v108_v19 }
  0x92   :  { %v123_v23 = vsel %vm122_vm4, %v121_v22, %v108_v19 }
  0xf6   :  { %v98_v12 = vpop.f32.mrf.mxu1 }
  0xf7   :  { %v101_v13 = vmax.f32 %v98_v12, 0.0 }
  0xf9   :  { %103 = vrot.lane.b32.xlu0 %v101_v13, %s217_s14 }
 0x16b   :  { %v104_v14 = vpop.permute.xlu0 %103 }
 0x16c   :  { %v106_v15 = vmax.f32 %v101_v13, %v104_v14 }
 0x16e   :  { %114 = vrot.lane.b32.xlu2 %v106_v15, %s218_s15  ;;  %111 = vrot.lane.b32.xlu1 %v106_v15, %s219_s16 }
 0x176   :  { %117 = vrot.lane.b32.xlu2 %v106_v15, %s220_s17 }
 0x1c8   :  { %v115_v20 = vpop.permute.xlu2 %114 }
 0x1d0   :  { %v118_v26 = vpop.permute.xlu2 %117 }
 0x1e0   :  { %v112_v24 = vpop.permute.xlu1 %111 }
 0x1e1   :  { %v125_v25 = vsel %vm124_vm5, %v123_v23, %v112_v24 }
 0x1e2   :  { %v127_v27 = vsel %vm126_vm6, %v125_v25, %v115_v20 }
 0x1e3   :  { %v129_v28 = vsel %vm128_vm7, %v127_v27, %v118_v26 }
 0x1e4   :  { %v131_v29 = vsel %vm130_vm8, %v129_v28, 0.0 }
 0x1e5   :  { %132 = vst [vmem:[#allocation5] sm:$0xff] %v131_v29 }
 0x1e6   :  { %143 = dma.vmem_to_hbm [thread:$0]  %s139_s20, 128, %s141_s23, [#allocation4]  }
 0x1e7   :  { %212 = dma.done.wait [#allocation4], 128  }
 0x1e8   :  { %213 = vsyncadd [#allocation4], 4294967168 }
 0x1e9   :  { %148 = vsyncpa [#allocation3], 1 }
 0x1ea   :  { %149 = vsyncpa [#allocation4], 1 }

</bundles_post_ra>
